<compile_context>
chip_gen: v7x
topology: tpu7x:2x2x1
jax: 0.10.0
libtpu: 0.0.40
codegen_flags: <defaults>
</compile_context>

<pallas_src>
import jax
import jax.numpy as jnp
import numpy as np
from jax.experimental import pallas as pl
from jax.experimental.pallas import tpu as pltpu

HID = 128  # encoder output width


def _round_up(x, m):
    return ((x + m - 1) // m) * m


# ----------------------------------------------------------------------------
# Fused Pallas kernel: encoder (D->256->128) + all heads (128->64H->32H->pad_out)
# ----------------------------------------------------------------------------
def _fused_kernel(x_ref, w1_ref, b1_ref, w2_ref, b2_ref,
                  hw1_ref, hb1_ref, hw2_ref, hb2_ref, hw3_ref, hb3_ref,
                  o_ref):
    # Encoder: relu(relu(x @ W1 + b1) @ W2 + b2)
    # bf16 MXU operands, f32 accumulation; bias + ReLU in f32.
    x = x_ref[...]  # bf16
    h1 = jnp.dot(x, w1_ref[...], preferred_element_type=jnp.float32) + b1_ref[...]
    h1 = jnp.maximum(h1, 0.0)
    h = jnp.dot(h1.astype(jnp.bfloat16), w2_ref[...],
                preferred_element_type=jnp.float32) + b2_ref[...]
    h = jnp.maximum(h, 0.0)

    # All heads at once (task + adversarials). hw2/hw3 are block-diagonal, so each
    # head's path stays independent; ReLU is elementwise so fusion is exact.
    hb = h.astype(jnp.bfloat16)
    a1 = jnp.dot(hb, hw1_ref[...], preferred_element_type=jnp.float32) + hb1_ref[...]
    a1 = jnp.maximum(a1, 0.0)
    a2 = jnp.dot(a1.astype(jnp.bfloat16), hw2_ref[...],
                 preferred_element_type=jnp.float32) + hb2_ref[...]
    a2 = jnp.maximum(a2, 0.0)
    a3 = jnp.dot(a2.astype(jnp.bfloat16), hw3_ref[...],
                 preferred_element_type=jnp.float32) + hb3_ref[...]

    # One fused lane-dense output slab: hidden in lanes [0,128), heads in [128, ...).
    o_ref[:, 0:HID] = h.astype(o_ref.dtype)
    o_ref[:, HID:] = a3.astype(o_ref.dtype)


_WEIGHT_NAMES = ("w1", "b1", "w2", "b2", "hw1", "hb1", "hw2", "hb2", "hw3", "hb3")


def fused_forward(x, packed):
    """Run the fused kernel. Returns (hidden (B,128), head slab (B, pad_out))."""
    B, D = x.shape
    pad_out = packed["hb3"].shape[1]
    slab_w = HID + pad_out

    # Batch tile: big tiles (up to 1024 rows, multiple of 16) to amortize the ~0.35 us
    # per-step overhead and approach HBM streaming roofline. For B > 16 the tile is
    # chosen so nb >= 2, letting the "parallel" batch axis shard across v7x's 2 TCs.
    if B <= 16:
        tile_b = 16
    else:
        tile_b = min(1024, _round_up(-(-B // 2), 16))
    b_pad = _round_up(B, tile_b)
    nb = b_pad // tile_b

    x = x.astype(jnp.bfloat16)
    if b_pad != B:
        x = jnp.pad(x, ((0, b_pad - B), (0, 0)))

    # Grid-invariant weights/biases: constant index_map (VMEM-resident, no re-DMA) and
    # single-buffered so the default double buffering doesn't waste VMEM.
    def w_spec(arr):
        nd = arr.ndim
        return pl.BlockSpec(arr.shape, lambda i, nd=nd: (0,) * nd,
                            pipeline_mode=pl.Buffered(1))

    in_specs = [pl.BlockSpec((tile_b, D), lambda i: (i, 0))]
    in_specs += [w_spec(packed[n]) for n in _WEIGHT_NAMES]
    out_specs = pl.BlockSpec((tile_b, slab_w), lambda i: (i, 0))

    # VMEM budget: double-buffered x (bf16) + output slab (f32) tiles, single-buffered
    # weights, plus headroom for intermediates. Clamped to stay valid on v7x (64 MiB).
    weight_bytes = sum(int(np.prod(packed[n].shape)) * packed[n].dtype.itemsize
                       for n in _WEIGHT_NAMES)
    vmem_bytes = 2 * tile_b * (D * 2 + slab_w * 4) + weight_bytes + (8 << 20)
    vmem_bytes = int(min(max(vmem_bytes, 32 << 20), 64 << 20))

    slab = pl.pallas_call(
        _fused_kernel,
        out_shape=jax.ShapeDtypeStruct((b_pad, slab_w), jnp.float32),
        grid=(nb,),
        in_specs=in_specs,
        out_specs=out_specs,
        compiler_params=pltpu.CompilerParams(
            dimension_semantics=("parallel",),
            vmem_limit_bytes=vmem_bytes),
    )(x, *[packed[n] for n in _WEIGHT_NAMES])

    return slab[:B, :HID], slab[:B, HID:]


# ----------------------------------------------------------------------------
# Parameter init (deterministic, PyTorch-like uniform bounds)
# ----------------------------------------------------------------------------
def _init_linear(key, in_dim, out_dim):
    kw, kb = jax.random.split(key)
    bound = 1.0 / np.sqrt(in_dim)
    w = jax.random.uniform(kw, (in_dim, out_dim), jnp.float32, -bound, bound)
    b = jax.random.uniform(kb, (1, out_dim), jnp.float32, -bound, bound)
    return w, b


def init_params(key, input_dim, output_dim, adv_dims):
    keys = jax.random.split(key, 2 + 3 + 3 * len(adv_dims))
    k = iter(keys)
    enc = {
        "l1": _init_linear(next(k), input_dim, 256),
        "l2": _init_linear(next(k), 256, HID),
    }
    task = {
        "l1": _init_linear(next(k), HID, 64),
        "l2": _init_linear(next(k), 64, 32),
        "l3": _init_linear(next(k), 32, output_dim),
    }
    advs = []
    for adv_dim in adv_dims:
        advs.append({
            "l1": _init_linear(next(k), HID, 64),
            "l2": _init_linear(next(k), 64, 32),
            "l3": _init_linear(next(k), 32, adv_dim),
        })
    return {"encoder": enc, "task": task, "advs": advs}


# ----------------------------------------------------------------------------
# Pack heads into wide / block-diagonal bf16 weights (done once, outside the kernel)
# ----------------------------------------------------------------------------
def _block_diag(mats):
    rows = sum(m.shape[0] for m in mats)
    cols = sum(m.shape[1] for m in mats)
    out = jnp.zeros((rows, cols), mats[0].dtype)
    r = c = 0
    for m in mats:
        out = out.at[r:r + m.shape[0], c:c + m.shape[1]].set(m)
        r += m.shape[0]
        c += m.shape[1]
    return out


def pack_params(params):
    """Returns (packed array dict, out_dims tuple). out_dims is static metadata — keep it
    out of any jitted pytree."""
    enc = params["encoder"]
    heads = [params["task"]] + list(params["advs"])  # task head first, then advs

    hw1 = jnp.concatenate([p["l1"][0] for p in heads], axis=1)   # (128, 64*H)
    hb1 = jnp.concatenate([p["l1"][1] for p in heads], axis=1)   # (1, 64*H)
    hw2 = _block_diag([p["l2"][0] for p in heads])               # (64H, 32H)
    hb2 = jnp.concatenate([p["l2"][1] for p in heads], axis=1)   # (1, 32H)
    hw3 = _block_diag([p["l3"][0] for p in heads])               # (32H, sum(out))
    hb3 = jnp.concatenate([p["l3"][1] for p in heads], axis=1)   # (1, sum(out))

    out_dims = tuple(int(p["l3"][0].shape[1]) for p in heads)
    total = sum(out_dims)
    pad_out = _round_up(total, 128)  # lane-dense output slab
    if pad_out != total:
        hw3 = jnp.pad(hw3, ((0, 0), (0, pad_out - total)))
        hb3 = jnp.pad(hb3, ((0, 0), (0, pad_out - total)))

    bf = jnp.bfloat16
    packed = {
        "w1": enc["l1"][0].astype(bf), "b1": enc["l1"][1],
        "w2": enc["l2"][0].astype(bf), "b2": enc["l2"][1],
        "hw1": hw1.astype(bf), "hb1": hb1,
        "hw2": hw2.astype(bf), "hb2": hb2,
        "hw3": hw3.astype(bf), "hb3": hb3,
    }
    return packed, out_dims


# ----------------------------------------------------------------------------
# Full forward (mirrors AdversarialSingle.forward); expects pre-packed params
# ----------------------------------------------------------------------------
def adversarial_single_forward(packed, out_dims, x):
    hidden, head_slab = fused_forward(x, packed)

    offs = np.cumsum((0,) + tuple(out_dims))
    prediction = head_slab[:, offs[0]:offs[1]]                   # task head
    adv_outputs = [head_slab[:, offs[i]:offs[i + 1]]             # adversarial heads
                   for i in range(1, len(out_dims))]

    # GradReverse is identity in the forward pass; adversarial heads consume `hidden`
    # directly (the gradient sign flip only matters for backward).
    return {
        "prediction": prediction,
        "adv_outputs": adv_outputs,
        "hidden": hidden,
        "classifier_hiddens": None,
        "adv_hiddens": None,
    }


# ----------------------------------------------------------------------------
# Pure-JAX f32 reference for correctness check
# ----------------------------------------------------------------------------
def _ref_forward(params, x):
    def lin(h, wb):
        return h @ wb[0] + wb[1]

    enc = params["encoder"]
    h = jnp.maximum(lin(jnp.maximum(lin(x, enc["l1"]), 0.0), enc["l2"]), 0.0)

    def head(h, p):
        a = jnp.maximum(lin(h, p["l1"]), 0.0)
        a = jnp.maximum(lin(a, p["l2"]), 0.0)
        return lin(a, p["l3"])

    return {
        "prediction": head(h, params["task"]),
        "adv_outputs": [head(h, p) for p in params["advs"]],
        "hidden": h,
    }


if __name__ == "__main__":
    B = 8
    input_dim = 32
    output_dim = 4
    adv_dims = [3, 5]

    key = jax.random.PRNGKey(0)
    k_params, k_x = jax.random.split(key)
    params = init_params(k_params, input_dim, output_dim, adv_dims)
    packed, out_dims = pack_params(params)  # one-time packing; reuse across forwards
    x = jax.random.normal(k_x, (B, input_dim), jnp.float32)

    out = adversarial_single_forward(packed, out_dims, x)
    jax.block_until_ready(out["prediction"])
    jax.block_until_ready(out["hidden"])
    for a in out["adv_outputs"]:
        jax.block_until_ready(a)

    ref = _ref_forward(params, x)
    assert out["prediction"].shape == (B, output_dim)
    assert out["hidden"].shape == (B, HID)
    assert [a.shape for a in out["adv_outputs"]] == [(B, d) for d in adv_dims]
    # bf16 matmul operands with f32 accumulation -> loosened tolerance vs f32 reference.
    np.testing.assert_allclose(np.asarray(out["hidden"]), np.asarray(ref["hidden"]),
                               rtol=5e-2, atol=5e-2)
    np.testing.assert_allclose(np.asarray(out["prediction"]),
                               np.asarray(ref["prediction"]), rtol=5e-2, atol=5e-2)
    for a, r in zip(out["adv_outputs"], ref["adv_outputs"]):
        np.testing.assert_allclose(np.asarray(a), np.asarray(r), rtol=5e-2, atol=5e-2)

    print("KERNEL_OK")
</pallas_src>

<mosaic_0001>
module attributes {stable_mosaic.version = 11 : i64} {
  func.func @_fused_kernel(%arg0: i32, %arg1: memref<16x32xbf16, #tpu.memory_space<vmem>>, %arg2: memref<32x256xbf16, #tpu.memory_space<vmem>>, %arg3: memref<1x256xf32, #tpu.memory_space<vmem>>, %arg4: memref<256x128xbf16, #tpu.memory_space<vmem>>, %arg5: memref<1x128xf32, #tpu.memory_space<vmem>>, %arg6: memref<128x192xbf16, #tpu.memory_space<vmem>>, %arg7: memref<1x192xf32, #tpu.memory_space<vmem>>, %arg8: memref<192x96xbf16, #tpu.memory_space<vmem>>, %arg9: memref<1x96xf32, #tpu.memory_space<vmem>>, %arg10: memref<96x128xbf16, #tpu.memory_space<vmem>>, %arg11: memref<1x128xf32, #tpu.memory_space<vmem>>, %arg12: memref<16x256xf32, #tpu.memory_space<vmem>>) attributes {dimension_semantics = [#tpu.dimension_semantics<parallel>], iteration_bounds = array<i64: 1>, scalar_prefetch = 0 : i64, scratch_operands = 0 : i64, tpu.core_type = #tpu.core_type<tc>, window_params = [{transform_indices = @transform_0, window_bounds = array<i64: 16, 32>}, {pipeline_mode = #tpu.pipeline_mode<synchronous>, transform_indices = @transform_1, window_bounds = array<i64: 32, 256>}, {pipeline_mode = #tpu.pipeline_mode<synchronous>, transform_indices = @transform_2, window_bounds = array<i64: 1, 256>}, {pipeline_mode = #tpu.pipeline_mode<synchronous>, transform_indices = @transform_3, window_bounds = array<i64: 256, 128>}, {pipeline_mode = #tpu.pipeline_mode<synchronous>, transform_indices = @transform_4, window_bounds = array<i64: 1, 128>}, {pipeline_mode = #tpu.pipeline_mode<synchronous>, transform_indices = @transform_5, window_bounds = array<i64: 128, 192>}, {pipeline_mode = #tpu.pipeline_mode<synchronous>, transform_indices = @transform_6, window_bounds = array<i64: 1, 192>}, {pipeline_mode = #tpu.pipeline_mode<synchronous>, transform_indices = @transform_7, window_bounds = array<i64: 192, 96>}, {pipeline_mode = #tpu.pipeline_mode<synchronous>, transform_indices = @transform_8, window_bounds = array<i64: 1, 96>}, {pipeline_mode = #tpu.pipeline_mode<synchronous>, transform_indices = @transform_9, window_bounds = array<i64: 96, 128>}, {pipeline_mode = #tpu.pipeline_mode<synchronous>, transform_indices = @transform_10, window_bounds = array<i64: 1, 128>}, {transform_indices = @transform_11, window_bounds = array<i64: 16, 256>}]} {
    %c0 = arith.constant 0 : index
    %c0_0 = arith.constant 0 : index
    %0 = vector.load %arg1[%c0, %c0_0] : memref<16x32xbf16, #tpu.memory_space<vmem>>, vector<16x32xbf16>
    %c0_1 = arith.constant 0 : index
    %c0_2 = arith.constant 0 : index
    %1 = vector.load %arg2[%c0_1, %c0_2] : memref<32x256xbf16, #tpu.memory_space<vmem>>, vector<32x256xbf16>
    %cst = arith.constant dense<0.000000e+00> : vector<16x256xf32>
    %2 = tpu.matmul %0, %1, %cst {dimension_numbers = #tpu.dot_dimension_numbers<[1], [0], [0], [1], [0, 0, 1, 1], [], []>} : vector<16x32xbf16>, vector<32x256xbf16>, vector<16x256xf32> -> vector<16x256xf32>
    %c0_3 = arith.constant 0 : index
    %c0_4 = arith.constant 0 : index
    %3 = vector.load %arg3[%c0_3, %c0_4] : memref<1x256xf32, #tpu.memory_space<vmem>>, vector<1x256xf32>
    %4 = vector.broadcast %3 : vector<1x256xf32> to vector<16x256xf32>
    %5 = arith.addf %2, %4 : vector<16x256xf32>
    %cst_5 = arith.constant 0.000000e+00 : f32
    %6 = vector.broadcast %cst_5 : f32 to vector<16x256xf32>
    %7 = arith.maximumf %5, %6 : vector<16x256xf32>
    %8 = arith.truncf %7 : vector<16x256xf32> to vector<16x256xbf16>
    %c0_6 = arith.constant 0 : index
    %c0_7 = arith.constant 0 : index
    %9 = vector.load %arg4[%c0_6, %c0_7] : memref<256x128xbf16, #tpu.memory_space<vmem>>, vector<256x128xbf16>
    %cst_8 = arith.constant dense<0.000000e+00> : vector<16x128xf32>
    %10 = tpu.matmul %8, %9, %cst_8 {dimension_numbers = #tpu.dot_dimension_numbers<[1], [0], [0], [1], [0, 0, 1, 1], [], []>} : vector<16x256xbf16>, vector<256x128xbf16>, vector<16x128xf32> -> vector<16x128xf32>
    %c0_9 = arith.constant 0 : index
    %c0_10 = arith.constant 0 : index
    %11 = vector.load %arg5[%c0_9, %c0_10] : memref<1x128xf32, #tpu.memory_space<vmem>>, vector<1x128xf32>
    %12 = vector.broadcast %11 : vector<1x128xf32> to vector<16x128xf32>
    %13 = arith.addf %10, %12 : vector<16x128xf32>
    %cst_11 = arith.constant 0.000000e+00 : f32
    %14 = vector.broadcast %cst_11 : f32 to vector<16x128xf32>
    %15 = arith.maximumf %13, %14 : vector<16x128xf32>
    %16 = arith.truncf %15 : vector<16x128xf32> to vector<16x128xbf16>
    %c0_12 = arith.constant 0 : index
    %c0_13 = arith.constant 0 : index
    %17 = vector.load %arg6[%c0_12, %c0_13] : memref<128x192xbf16, #tpu.memory_space<vmem>>, vector<128x192xbf16>
    %cst_14 = arith.constant dense<0.000000e+00> : vector<16x192xf32>
    %18 = tpu.matmul %16, %17, %cst_14 {dimension_numbers = #tpu.dot_dimension_numbers<[1], [0], [0], [1], [0, 0, 1, 1], [], []>} : vector<16x128xbf16>, vector<128x192xbf16>, vector<16x192xf32> -> vector<16x192xf32>
    %c0_15 = arith.constant 0 : index
    %c0_16 = arith.constant 0 : index
    %19 = vector.load %arg7[%c0_15, %c0_16] : memref<1x192xf32, #tpu.memory_space<vmem>>, vector<1x192xf32>
    %20 = vector.broadcast %19 : vector<1x192xf32> to vector<16x192xf32>
    %21 = arith.addf %18, %20 : vector<16x192xf32>
    %cst_17 = arith.constant 0.000000e+00 : f32
    %22 = vector.broadcast %cst_17 : f32 to vector<16x192xf32>
    %23 = arith.maximumf %21, %22 : vector<16x192xf32>
    %24 = arith.truncf %23 : vector<16x192xf32> to vector<16x192xbf16>
    %c0_18 = arith.constant 0 : index
    %c0_19 = arith.constant 0 : index
    %25 = vector.load %arg8[%c0_18, %c0_19] : memref<192x96xbf16, #tpu.memory_space<vmem>>, vector<192x96xbf16>
    %cst_20 = arith.constant dense<0.000000e+00> : vector<16x96xf32>
    %26 = tpu.matmul %24, %25, %cst_20 {dimension_numbers = #tpu.dot_dimension_numbers<[1], [0], [0], [1], [0, 0, 1, 1], [], []>} : vector<16x192xbf16>, vector<192x96xbf16>, vector<16x96xf32> -> vector<16x96xf32>
    %c0_21 = arith.constant 0 : index
    %c0_22 = arith.constant 0 : index
    %27 = vector.load %arg9[%c0_21, %c0_22] : memref<1x96xf32, #tpu.memory_space<vmem>>, vector<1x96xf32>
    %28 = vector.broadcast %27 : vector<1x96xf32> to vector<16x96xf32>
    %29 = arith.addf %26, %28 : vector<16x96xf32>
    %cst_23 = arith.constant 0.000000e+00 : f32
    %30 = vector.broadcast %cst_23 : f32 to vector<16x96xf32>
    %31 = arith.maximumf %29, %30 : vector<16x96xf32>
    %32 = arith.truncf %31 : vector<16x96xf32> to vector<16x96xbf16>
    %c0_24 = arith.constant 0 : index
    %c0_25 = arith.constant 0 : index
    %33 = vector.load %arg10[%c0_24, %c0_25] : memref<96x128xbf16, #tpu.memory_space<vmem>>, vector<96x128xbf16>
    %cst_26 = arith.constant dense<0.000000e+00> : vector<16x128xf32>
    %34 = tpu.matmul %32, %33, %cst_26 {dimension_numbers = #tpu.dot_dimension_numbers<[1], [0], [0], [1], [0, 0, 1, 1], [], []>} : vector<16x96xbf16>, vector<96x128xbf16>, vector<16x128xf32> -> vector<16x128xf32>
    %c0_27 = arith.constant 0 : index
    %c0_28 = arith.constant 0 : index
    %35 = vector.load %arg11[%c0_27, %c0_28] : memref<1x128xf32, #tpu.memory_space<vmem>>, vector<1x128xf32>
    %36 = vector.broadcast %35 : vector<1x128xf32> to vector<16x128xf32>
    %37 = arith.addf %34, %36 : vector<16x128xf32>
    %c0_29 = arith.constant 0 : index
    %c0_30 = arith.constant 0 : index
    %38 = vector.load %arg12[%c0_29, %c0_30] : memref<16x256xf32, #tpu.memory_space<vmem>>, vector<16x128xf32>
    tpu.vector_store %arg12[%c0_29, %c0_30], %15 {strides = array<i32>} : memref<16x256xf32, #tpu.memory_space<vmem>>, vector<16x128xf32>,
    %c0_31 = arith.constant 0 : index
    %c128 = arith.constant 128 : index
    %39 = vector.load %arg12[%c0_31, %c128] : memref<16x256xf32, #tpu.memory_space<vmem>>, vector<16x128xf32>
    tpu.vector_store %arg12[%c0_31, %c128], %37 {strides = array<i32>} : memref<16x256xf32, #tpu.memory_space<vmem>>, vector<16x128xf32>,
    return
  }
  func.func @transform_0(%arg0: i32) -> (i32, i32) {
    %c0_i32 = arith.constant 0 : i32
    %c0_i32_0 = arith.constant 0 : i32
    return %arg0, %c0_i32 : i32, i32
  }
  func.func @transform_1(%arg0: i32) -> (i32, i32) {
    %c0_i32 = arith.constant 0 : i32
    %c0_i32_0 = arith.constant 0 : i32
    %c0_i32_1 = arith.constant 0 : i32
    return %c0_i32, %c0_i32_0 : i32, i32
  }
  func.func @transform_2(%arg0: i32) -> (i32, i32) {
    %c0_i32 = arith.constant 0 : i32
    %c0_i32_0 = arith.constant 0 : i32
    %c0_i32_1 = arith.constant 0 : i32
    return %c0_i32, %c0_i32_0 : i32, i32
  }
  func.func @transform_3(%arg0: i32) -> (i32, i32) {
    %c0_i32 = arith.constant 0 : i32
    %c0_i32_0 = arith.constant 0 : i32
    %c0_i32_1 = arith.constant 0 : i32
    return %c0_i32, %c0_i32_0 : i32, i32
  }
  func.func @transform_4(%arg0: i32) -> (i32, i32) {
    %c0_i32 = arith.constant 0 : i32
    %c0_i32_0 = arith.constant 0 : i32
    %c0_i32_1 = arith.constant 0 : i32
    return %c0_i32, %c0_i32_0 : i32, i32
  }
  func.func @transform_5(%arg0: i32) -> (i32, i32) {
    %c0_i32 = arith.constant 0 : i32
    %c0_i32_0 = arith.constant 0 : i32
    %c0_i32_1 = arith.constant 0 : i32
    return %c0_i32, %c0_i32_0 : i32, i32
  }
  func.func @transform_6(%arg0: i32) -> (i32, i32) {
    %c0_i32 = arith.constant 0 : i32
    %c0_i32_0 = arith.constant 0 : i32
    %c0_i32_1 = arith.constant 0 : i32
    return %c0_i32, %c0_i32_0 : i32, i32
  }
  func.func @transform_7(%arg0: i32) -> (i32, i32) {
    %c0_i32 = arith.constant 0 : i32
    %c0_i32_0 = arith.constant 0 : i32
    %c0_i32_1 = arith.constant 0 : i32
    return %c0_i32, %c0_i32_0 : i32, i32
  }
  func.func @transform_8(%arg0: i32) -> (i32, i32) {
    %c0_i32 = arith.constant 0 : i32
    %c0_i32_0 = arith.constant 0 : i32
    %c0_i32_1 = arith.constant 0 : i32
    return %c0_i32, %c0_i32_0 : i32, i32
  }
  func.func @transform_9(%arg0: i32) -> (i32, i32) {
    %c0_i32 = arith.constant 0 : i32
    %c0_i32_0 = arith.constant 0 : i32
    %c0_i32_1 = arith.constant 0 : i32
    return %c0_i32, %c0_i32_0 : i32, i32
  }
  func.func @transform_10(%arg0: i32) -> (i32, i32) {
    %c0_i32 = arith.constant 0 : i32
    %c0_i32_0 = arith.constant 0 : i32
    %c0_i32_1 = arith.constant 0 : i32
    return %c0_i32, %c0_i32_0 : i32, i32
  }
  func.func @transform_11(%arg0: i32) -> (i32, i32) {
    %c0_i32 = arith.constant 0 : i32
    %c0_i32_0 = arith.constant 0 : i32
    return %arg0, %c0_i32 : i32, i32
  }
}

</mosaic_0001>

<bundles_post_ra>
// kernel: tpu_custom_call.1
= control target key start
LH: loop header
LB: loop body
LE: loop exit
PB: predicated region body
PF: predicated region fallthrough
CT: control target
= control target key end

     0   :  { %16 = vsyncpa [#allocation3], 0  ;;  %s1312_s0 = inlined_call_operand.vmem [shape: bf16[16,32], index: 0, kind: input, shape index: {}]   ;;  %s1313_s1 = inlined_call_operand.hbm [shape: bf16[32,256], index: 1, kind: input, shape index: {}]   ;;  %s1314_s2 = inlined_call_operand.vmem [shape: f32[1,256], index: 2, kind: input, shape index: {}]   ;;  %s1315_s3 = inlined_call_operand.vmem [shape: bf16[256,128], index: 3, kind: input, shape index: {}]   ;;  %s1316_s4 = inlined_call_operand.vmem [shape: f32[1,128], index: 4, kind: input, shape index: {}]   ;;  %s1317_s5 = inlined_call_operand.vmem [shape: bf16[128,192], index: 5, kind: input, shape index: {}]   ;;  %s1318_s6 = inlined_call_operand.vmem [shape: f32[1,192], index: 6, kind: input, shape index: {}]   ;;  %s1319_s7 = inlined_call_operand.vmem [shape: bf16[192,96], index: 7, kind: input, shape index: {}]   ;;  %s1320_s8 = inlined_call_operand.vmem [shape: f32[1,96], index: 8, kind: input, shape index: {}]   ;;  %s1321_s9 = inlined_call_operand.hbm [shape: bf16[96,128], index: 9, kind: input, shape index: {}]   ;;  %s1322_s10 = inlined_call_operand.vmem [shape: f32[1,128], index: 10, kind: input, shape index: {}]   ;;  %s1323_s11 = inlined_call_operand.hbm [shape: f32[16,256], index: 11, kind: output, shape index: {}]  }
   0x1   :  { %17 = vsyncpa [#allocation6], 0 }
   0x2   :  { %18 = vsyncpa [#allocation4], 0  ;;  %s1028_s17 = smov [#allocation2]   ;;  %s956_s21 = scalar_lea.hbm %s1313_s1, 512 }
   0x3   :  { %s26_s18 = sshll.u32 %s1028_s17, 4  ;;  %p957_p0 = scmp.ne.s32.totalorder %s1313_s1, %s956_s21  ;;  %s27_s18 = int_to_ptr.vmem [resolvable:$true] %s26_s18 }
   0x4   :  { %p960_p1 = scmp.lt.u32.totalorder %s956_s21, %s1313_s1 }
   0x6   :  { %p962_p2 = pnand %p960_p1, %p957_p0 }
   0x8   :  { %965 = shalt.err (!%p962_p2)
}
   0x9   :  { %s966_s26 = scalar_lea.vmem %s27_s18, 512  ;;  %p971_p4 = scmp.lt.s32.totalorder %s27_s18, %s27_s18 }
   0xa   :  { %p967_p3 = scmp.ne.s32.totalorder %s27_s18, %s966_s26  ;;  %p972_p5 = scmp.lt.s32.totalorder %s966_s26, %s966_s26 }
   0xc   :  { %p973_p6 = por %p972_p5, %p971_p4 }
   0xe   :  { %p974_p7 = pnand %p973_p6, %p967_p3 }
  0x10   :  { %977 = shalt.err (!%p974_p7)
}
  0x11   :  { %s1029_s27 = smov 128   ;;  %s1030_s28 = smov 8  }
  0x12   :  { %32 = dma.hbm_to_vmem [thread:$0]  %s1313_s1, 512, %s27_s18, [#allocation3], %s1029_s27, %s1029_s27, %s1030_s28  }
  0x13   :  { %s1031_s12 = smov [#allocation5]   ;;  %s978_s16 = scalar_lea.hbm %s1321_s9, 768 }
  0x14   :  { %s52_s13 = sshll.u32 %s1031_s12, 4  ;;  %p979_p8 = scmp.ne.s32.totalorder %s1321_s9, %s978_s16  ;;  %s53_s13 = int_to_ptr.vmem [resolvable:$true] %s52_s13 }
  0x15   :  { %p982_p9 = scmp.lt.u32.totalorder %s978_s16, %s1321_s9 }
  0x17   :  { %p984_p10 = pnand %p982_p9, %p979_p8 }
  0x19   :  { %987 = shalt.err (!%p984_p10)
}
  0x1a   :  { %s988_s22 = scalar_lea.vmem %s53_s13, 768  ;;  %p993_p12 = scmp.lt.s32.totalorder %s53_s13, %s53_s13 }
  0x1b   :  { %p989_p11 = scmp.ne.s32.totalorder %s53_s13, %s988_s22  ;;  %p994_p13 = scmp.lt.s32.totalorder %s988_s22, %s988_s22 }
  0x1d   :  { %p995_p0 = por %p994_p13, %p993_p12 }
  0x1f   :  { %p996_p1 = pnand %p995_p0, %p989_p11 }
  0x21   :  { %999 = shalt.err (!%p996_p1)
}
  0x22   :  { %s1032_s1 = smov 64   ;;  %s1033_s18 = smov 4  }
  0x23   :  { %58 = dma.hbm_to_vmem [thread:$0]  %s1321_s9, 768, %s53_s13, [#allocation6], %s1032_s1, %s1032_s1, %s1033_s18  }
  0x24   :  { %1022 = dma.done.wait [#allocation3], 512  }
  0x25   :  { %1023 = vsyncadd [#allocation3], 4294966784 }
  0x26   :  { %1024 = dma.done.wait [#allocation6], 768  }
  0x27   :  { %1025 = vsyncadd [#allocation6], 4294966528  ;;  %v1034_v0 = vmov 0   ;;  %v891_v1 = vld [vmem:[#allocation2 + $0x4] ss:$8 sps:$4 sm:$0xff]   ;;  %vm111_vm0 = vcmask 261120   ;;  %v76_v32 = vlaneseq }
  0x28   :  { %147 = vmatprep.mubr.bf16.mxu0 %v1034_v0  ;;  %v893_v2 = vld [vmem:[#allocation2] ss:$8 sps:$4 sm:$0xff]   ;;  %115 = vmatprep.subr.bf16.mxu0 %v891_v1  ;;  %v894_v3 = vld [vmem:[#allocation2 + $0x14] ss:$8 sps:$4 sm:$0xff]   ;;  %v896_v4 = vld [vmem:[#allocation2 + $0x10] ss:$8 sps:$4 sm:$0xff]  }
  0x29   :  { %116 = vmatpush1.bf16.msra.mxu0 %v893_v2  ;;  %v897_v5 = vld [vmem:[%s1312_s0] sm:$0xff]   ;;  %v900_v8 = vld [vmem:[%s1315_s3 + $0x48] sm:$0xff]   ;;  %v902_v10 = vld [vmem:[%s1315_s3 + $0x50] sm:$0xff]   ;;  %v1208_v33 = vshrl.u32 %v76_v32, 7  ;;  %vm603_vm1 = vcmask 523264   ;;  %vm1036_vm2 = vmmov 0  }
  0x2a   :  { %117 = vmatprep.subr.bf16.mxu0 %v894_v3  ;;  %v898_v6 = vld [vmem:[%s1315_s3 + $0x40] sm:$0xff]   ;;  %v901_v9 = vld [vmem:[%s1315_s3 + $0x8] sm:$0xff]   ;;  %v903_v11 = vld [vmem:[%s1315_s3 + $0x10] sm:$0xff]   ;;  %vm706_vm3 = vcmask 785408   ;;  %s1037_s9 = smov [#allocation7]  }
  0x2b   :  { %v899_v7 = vld [vmem:[%s1315_s3] sm:$0xff]   ;;  %834 = vmatprep.subr.bf16.mxu1 %v898_v6  ;;  %v904_v12 = vld [vmem:[%s1315_s3 + $0x58] sm:$0xff]   ;;  %v908_v16 = vld [vmem:[%s1315_s3 + $0x68] sm:$0xff]   ;;  %v78_v34 = vsub.s32 0, %v1208_v33  ;;  %v82_v36 = vsub.s32 1, %v1208_v33  ;;  %s760_s28 = sshll.u32 %s1037_s9, 4  ;;  %s761_s28 = int_to_ptr.vmem [resolvable:$true] %s760_s28 }
  0x2c   :  { %835 = vmatpush3.bf16.msra.mxu1 %v899_v7  ;;  %v905_v13 = vld [vmem:[%s1315_s3 + $0x18] sm:$0xff]   ;;  %v906_v14 = vld [vmem:[%s1315_s3 + $0x60] sm:$0xff]   ;;  %v909_v17 = vld [vmem:[%s1315_s3 + $0x28] sm:$0xff]   ;;  %p1005_p3 = scmp.lt.s32.totalorder %s761_s28, %s761_s28 }
  0x2d   :  { %118 = vmatpush1.bf16.msra.mxu0 %v896_v4  ;;  %836 = vmatprep.subr.bf16.mxu1 %v900_v8  ;;  %v907_v15 = vld [vmem:[%s1315_s3 + $0x20] sm:$0xff]   ;;  %v910_v18 = vld [vmem:[%s1315_s3 + $0x70] sm:$0xff]   ;;  %v912_v20 = vld [vmem:[%s1315_s3 + $0x78] sm:$0xff]  }
  0x2e   :  { %v911_v19 = vld [vmem:[%s1315_s3 + $0x30] sm:$0xff]   ;;  %v913_v21 = vld [vmem:[%s1315_s3 + $0x38] sm:$0xff]   ;;  %v914_v22 = vld [vmem:[%s1317_s5] ss:$8 sps:$4 sm:$0xff]  }
  0x2f   :  { %v916_v23 = vld [vmem:[%s1317_s5 + $0x4] ss:$8 sps:$4 sm:$0xff]   ;;  %v919_v24 = vld [vmem:[%s1317_s5 + $0x14] ss:$8 sps:$4 sm:$0xff]   ;;  %v917_v25 = vld [vmem:[%s1317_s5 + $0x10] ss:$8 sps:$4 sm:$0xff]  }
  0x30   :  { %778 = vmatmul.mubr.msk.bf16.vlgmr.msra.gmra.mrb[0].mxu0 %vm111_vm0, %v897_v5  ;;  %837 = vmatpush3.bf16.msra.mxu1 %v901_v9  ;;  %v922_v26 = vld [vmem:[%s1317_s5 + $0x24] ss:$8 sps:$4 sm:$0xff]   ;;  %v920_v27 = vld [vmem:[%s1317_s5 + $0x20] ss:$8 sps:$4 sm:$0xff]   ;;  %v925_v28 = vld [vmem:[%s1317_s5 + $0x34] ss:$8 sps:$4 sm:$0xff]  }
  0x31   :  { %483 = vmatprep.mubr.bf16.mxu0 %v1034_v0  ;;  %838 = vmatprep.subr.bf16.mxu1 %v902_v10  ;;  %v923_v29 = vld [vmem:[%s1317_s5 + $0x30] ss:$8 sps:$4 sm:$0xff]   ;;  %v928_v30 = vld [vmem:[%s1317_s5 + $0x44] ss:$8 sps:$4 sm:$0xff]   ;;  %v926_v31 = vld [vmem:[%s1317_s5 + $0x40] ss:$8 sps:$4 sm:$0xff]  }
  0x32   :  { %451 = vmatprep.subr.bf16.mxu0 %v916_v23  ;;  %v74_v35 = vld [vmem:[%s1314_s2] sm:$0x3]  ;;  %v931_v53 = vld [vmem:[%s1317_s5 + $0x54] ss:$8 sps:$4 sm:$0xff]   ;;  %v929_v54 = vld [vmem:[%s1317_s5 + $0x50] ss:$8 sps:$4 sm:$0xff]  }
  0x33   :  { %452 = vmatpush1.bf16.msra.mxu0 %v914_v22  ;;  %v79_v37 = vrot.slane %v74_v35, %v78_v34  ;;  %v83_v38 = vrot.slane %v74_v35, %v82_v36  ;;  %v934_v55 = vld [vmem:[%s1317_s5 + $0x64] ss:$8 sps:$4 sm:$0xff]   ;;  %v932_v56 = vld [vmem:[%s1317_s5 + $0x60] ss:$8 sps:$4 sm:$0xff]   ;;  %v937_v57 = vld [vmem:[%s1317_s5 + $0x74] ss:$8 sps:$4 sm:$0xff]  }
  0x34   :  { %839 = vmatpush3.bf16.msra.mxu1 %v903_v11  ;;  %453 = vmatprep.subr.bf16.mxu0 %v919_v24  ;;  %v935_v58 = vld [vmem:[%s1317_s5 + $0x70] ss:$8 sps:$4 sm:$0xff]   ;;  %v938_v59 = vld [vmem:[%s1319_s7] sm:$0xff]   ;;  %v939_v60 = vld [vmem:[%s1319_s7 + $0x8] sm:$0xff]  }
  0x35   :  { %840 = vmatprep.subr.bf16.mxu1 %v904_v12  ;;  %v940_v61 = vld [vmem:[%s1319_s7 + $0x10] sm:$0xff]   ;;  %v941_v62 = vld [vmem:[%s1319_s7 + $0x18] sm:$0xff]   ;;  %v942_v63 = vld [vmem:[%s1319_s7 + $0x20] sm:$0xff]  }
  0x36   :  { %v943_v1 = vld [vmem:[%s1319_s7 + $0x28] sm:$0xff]   ;;  %v944_v2 = vld [vmem:[%s1319_s7 + $0x30] sm:$0xff]   ;;  %v945_v3 = vld [vmem:[%s1319_s7 + $0x38] sm:$0xff]  }
  0x37   :  { %454 = vmatpush1.bf16.msra.mxu0 %v917_v25  ;;  %v946_v4 = vld [vmem:[%s1319_s7 + $0x40] sm:$0xff]   ;;  %v951_v22 = vld [vmem:[#allocation5 + $0x8] sm:$0xff]   ;;  %v952_v23 = vld [vmem:[#allocation5 + $0x10] sm:$0xff]  }
  0x38   :  { %841 = vmatpush3.bf16.msra.mxu1 %v905_v13  ;;  %455 = vmatprep.subr.bf16.mxu0 %v922_v26  ;;  %v779_v6 = vld [vmem:[%s1316_s4] ss:$0 sm:$0xff]  ;;  %v953_v24 = vld [vmem:[#allocation5 + $0x18] sm:$0xff]   ;;  %v955_v33 = vld [vmem:[#allocation5 + $0x28] sm:$0xff]  }
  0x39   :  { %842 = vmatprep.subr.bf16.mxu1 %v906_v14 }
  0x3b   :  { %456 = vmatpush1.bf16.msra.mxu0 %v920_v27 }
  0x3c   :  { %843 = vmatpush3.bf16.msra.mxu1 %v907_v15  ;;  %457 = vmatprep.subr.bf16.mxu0 %v925_v28 }
  0x3d   :  { %844 = vmatprep.subr.bf16.mxu1 %v908_v16 }
  0x3f   :  { %458 = vmatpush1.bf16.msra.mxu0 %v923_v29 }
  0x40   :  { %845 = vmatpush3.bf16.msra.mxu1 %v909_v17  ;;  %459 = vmatprep.subr.bf16.mxu0 %v928_v30  ;;  %v947_v17 = vld [vmem:[%s1319_s7 + $0x48] sm:$0xff]  }
  0x41   :  { %846 = vmatprep.subr.bf16.mxu1 %v910_v18  ;;  %v948_v18 = vld [vmem:[%s1319_s7 + $0x50] sm:$0xff]  }
  0x43   :  { %460 = vmatpush1.bf16.msra.mxu0 %v926_v31 }
  0x44   :  { %847 = vmatpush3.bf16.msra.mxu1 %v911_v19  ;;  %461 = vmatprep.subr.bf16.mxu0 %v931_v53  ;;  %v949_v19 = vld [vmem:[%s1319_s7 + $0x58] sm:$0xff]   ;;  %v826_v53 = vld [vmem:[%s1322_s10] ss:$0 sm:$0xff] }
  0x45   :  { %848 = vmatprep.subr.bf16.mxu1 %v912_v20  ;;  %v950_v20 = vld [vmem:[#allocation5] sm:$0xff]  }
  0x47   :  { %462 = vmatpush1.bf16.msra.mxu0 %v929_v54 }
  0x48   :  { %849 = vmatpush3.bf16.msra.mxu1 %v913_v21  ;;  %463 = vmatprep.subr.bf16.mxu0 %v934_v55  ;;  %v1035_v21 = vmov 0.0  }
  0x49   :  { %607 = vmatprep.subr.bf16.mxu1 %v1034_v0 }
  0x4b   :  { %464 = vmatpush1.bf16.msra.mxu0 %v932_v56 }
  0x4c   :  { %465 = vmatprep.subr.bf16.mxu0 %v937_v57 }
  0x4f   :  { %466 = vmatpush1.bf16.msra.mxu0 %v935_v58 }
  0x50   :  { %863 = vmatprep.subr.bf16.mxu0 %v1035_v21 }
 0x103   :  { %v149_v39 = vpop.f32.mrb[0].mxu0 }
 0x104   :  { %v150_v40 = vadd.f32 %v149_v39, %v79_v37  ;;  %v151_v41 = vpop.f32.mrb[1].mxu0 }
 0x105   :  { %v152_v42 = vadd.f32 %v151_v41, %v83_v38  ;;  %v153_v43 = vpop.f32.mrb[2].mxu0 }
 0x106   :  { %v154_v44 = vadd.f32 %v153_v43, %v79_v37  ;;  %v155_v45 = vpop.f32.mrb[3].mxu0  ;;  %v158_v47 = vmax.f32 %v150_v40, 0.0 }
 0x107   :  { %v156_v46 = vadd.f32 %v155_v45, %v83_v38  ;;  %v159_v49 = vmax.f32 %v152_v42, 0.0 }
 0x108   :  { %v160_v48 = vmax.f32 %v154_v44, 0.0 }
 0x109   :  { %v161_v50 = vmax.f32 %v156_v46, 0.0 }
 0x10a   :  { %v162_v51 = vpack.c.bf16 %v160_v48, %v158_v47 }
 0x10b   :  { %v163_v52 = vpack.c.bf16 %v161_v50, %v159_v49 }
 0x10d   :  { %331 = vmatprep.mubr.bf16.mxu1 %v163_v52 }
 0x10e   :  { %332 = vmatmul.mubr.bf16.vlgmr.msra.gmra.mrb[0].mxu1 %v162_v51 }
 0x10f   :  { %608 = vmatpush1.bf16.msra.mxu1 %v938_v59 }
 0x110   :  { %609 = vmatprep.subr.bf16.mxu1 %v1034_v0 }
 0x113   :  { %610 = vmatpush1.bf16.msra.mxu1 %v939_v60 }
 0x114   :  { %611 = vmatprep.subr.bf16.mxu1 %v1034_v0 }
 0x117   :  { %612 = vmatpush1.bf16.msra.mxu1 %v940_v61 }
 0x118   :  { %613 = vmatprep.subr.bf16.mxu1 %v1034_v0 }
 0x11b   :  { %614 = vmatpush1.bf16.msra.mxu1 %v941_v62 }
 0x11c   :  { %615 = vmatprep.subr.bf16.mxu1 %v1034_v0 }
 0x11f   :  { %616 = vmatpush1.bf16.msra.mxu1 %v942_v63 }
 0x120   :  { %617 = vmatprep.subr.bf16.mxu1 %v1034_v0 }
 0x123   :  { %618 = vmatpush1.bf16.msra.mxu1 %v943_v1 }
 0x124   :  { %619 = vmatprep.subr.bf16.mxu1 %v1034_v0 }
 0x127   :  { %620 = vmatpush1.bf16.msra.mxu1 %v944_v2 }
 0x128   :  { %621 = vmatprep.subr.bf16.mxu1 %v1034_v0 }
 0x12b   :  { %622 = vmatpush1.bf16.msra.mxu1 %v945_v3 }
 0x12c   :  { %623 = vmatprep.subr.bf16.mxu1 %v1034_v0 }
 0x12f   :  { %624 = vmatpush1.bf16.msra.mxu1 %v946_v4 }
 0x130   :  { %625 = vmatprep.subr.bf16.mxu1 %v1034_v0 }
 0x133   :  { %626 = vmatpush1.bf16.msra.mxu1 %v947_v17 }
 0x134   :  { %627 = vmatprep.subr.bf16.mxu1 %v1034_v0 }
 0x137   :  { %628 = vmatpush1.bf16.msra.mxu1 %v948_v18 }
 0x138   :  { %629 = vmatprep.subr.bf16.mxu1 %v1034_v0  ;;  %v359_v0 = vld [vmem:[%s1318_s6] sm:$0x3] }
 0x139   :  { %v364_v25 = vrot.slane %v359_v0, %v78_v34  ;;  %v368_v26 = vrot.slane %v359_v0, %v82_v36  ;;  %v954_v34 = vld [vmem:[#allocation5 + $0x20] sm:$0xff]  }
 0x13a   :  { %v812_v36 = vld [vmem:[%s1320_s8] ss:$0 sm:$0xff]  ;;  %s1000_s8 = scalar_lea.vmem %s761_s28, 512 }
 0x13b   :  { %630 = vmatpush1.bf16.msra.mxu1 %v949_v19  ;;  %p1001_p2 = scmp.ne.s32.totalorder %s761_s28, %s1000_s8  ;;  %p1006_p4 = scmp.lt.s32.totalorder %s1000_s8, %s1000_s8 }
 0x13d   :  { %p1007_p5 = por %p1006_p4, %p1005_p3 }
 0x13f   :  { %p1008_p6 = pnand %p1007_p5, %p1001_p2 }
 0x1e1   :  { %v850_v5 = vpop.f32.mrb[0].mxu1 }
 0x1e2   :  { %v851_v7 = vpop.f32.mrb[1].mxu1 }
 0x1e3   :  { %v852_v8 = vadd.f32 %v851_v7, %v850_v5  ;;  %v853_v9 = vpop.f32.mrb[2].mxu1 }
 0x1e4   :  { %v854_v10 = vpop.f32.mrb[3].mxu1 }
 0x1e5   :  { %v334_v11 = vadd.f32 %v852_v8, %v779_v6  ;;  %v855_v12 = vadd.f32 %v854_v10, %v853_v9 }
 0x1e7   :  { %v340_v13 = vmax.f32 %v334_v11, 0.0  ;;  %v337_v14 = vadd.f32 %v855_v12, %v779_v6 }
 0x1e9   :  { %751 = vst [vmem:[#allocation7] sm:$0xff] %v340_v13  ;;  %v341_v15 = vmax.f32 %v337_v14, 0.0 }
 0x1eb   :  { %v342_v16 = vpack.c.bf16 %v341_v15, %v340_v13  ;;  %752 = vst [vmem:[#allocation7 + $0x10] sm:$0xff] %v341_v15 }
 0x1ed   :  { %484 = vmatmul.mubr.bf16.vlgmr.msra.gmra.mrb[4].mxu0 %v342_v16 }
 0x1ee   :  { %864 = vmatpush3.bf16.msra.mxu0 %v950_v20  ;;  %875 = vmatprep.mubr.msk.bf16.mxu0 %vm1036_vm2, %v1035_v21 }
 0x1ef   :  { %865 = vmatprep.subr.bf16.mxu0 %v1035_v21 }
 0x1f2   :  { %866 = vmatpush3.bf16.msra.mxu0 %v951_v22 }
 0x1f3   :  { %867 = vmatprep.subr.bf16.mxu0 %v1035_v21 }
 0x1f6   :  { %868 = vmatpush3.bf16.msra.mxu0 %v952_v23 }
 0x1f7   :  { %869 = vmatprep.subr.bf16.mxu0 %v1035_v21 }
 0x1fa   :  { %870 = vmatpush3.bf16.msra.mxu0 %v953_v24 }
 0x1fb   :  { %871 = vmatprep.subr.bf16.mxu0 %v1035_v21 }
 0x1fe   :  { %872 = vmatpush3.bf16.msra.mxu0 %v954_v34 }
 0x1ff   :  { %873 = vmatprep.subr.bf16.mxu0 %v1035_v21 }
 0x202   :  { %874 = vmatpush3.bf16.msra.mxu0 %v955_v33 }
 0x2c0   :  { %v485_v27 = vpop.f32.mrb[4].mxu0 }
 0x2c1   :  { %v486_v28 = vadd.f32 %v485_v27, %v364_v25  ;;  %v487_v29 = vpop.f32.mrb[5].mxu0 }
 0x2c2   :  { %v488_v30 = vadd.f32 %v487_v29, %v368_v26  ;;  %v489_v31 = vpop.f32.mrb[6].mxu0 }
 0x2c3   :  { %v490_v32 = vadd.f32 %v489_v31, %v364_v25  ;;  %v491_v35 = vpop.f32.mrb[7].mxu0  ;;  %v494_v38 = vmax.f32 %v486_v28, 0.0 }
 0x2c4   :  { %v492_v37 = vadd.f32 %v491_v35, %v368_v26  ;;  %v495_v40 = vmax.f32 %v488_v30, 0.0 }
 0x2c5   :  { %v496_v39 = vmax.f32 %v490_v32, 0.0 }
 0x2c6   :  { %v497_v41 = vmax.f32 %v492_v37, 0.0 }
 0x2c7   :  { %v498_v42 = vpack.c.bf16 %v496_v39, %v494_v38 }
 0x2c8   :  { %v499_v43 = vpack.c.bf16 %v497_v41, %v495_v40 }
 0x2ca   :  { %825 = vmatprep.mubr.msk.bf16.mxu1 %vm603_vm1, %v499_v43 }
 0x2cb   :  { %640 = vmatmul.mubr.bf16.vlgmr.msra.gmra.mrb[4].mxu1 %v498_v42 }
 0x39e   :  { %v641_v44 = vpop.f32.mrb[4].mxu1 }
 0x39f   :  { %v642_v45 = vadd.f32 %v812_v36, %v641_v44  ;;  %v643_v46 = vpop.f32.mrb[5].mxu1 }
 0x3a0   :  { %v644_v47 = vpop.f32.mrb[6].mxu1 }
 0x3a1   :  { %v645_v48 = vadd.f32 %v812_v36, %v644_v47  ;;  %v646_v49 = vpop.f32.mrb[7].mxu1  ;;  %v648_v50 = vmax.f32 %v642_v45, 0.0 }
 0x3a3   :  { %v649_v51 = vmax.f32 %v645_v48, 0.0 }
 0x3a5   :  { %v650_v52 = vpack.c.bf16 %v649_v51, %v648_v50 }
 0x3a7   :  { %876 = vmatmul.mubr.msk.bf16.vlgmr.msra.gmra.mrb[8].mxu0 %vm706_vm3, %v650_v52 }
 0x47a   :  { %v744_v54 = vpop.f32.mrb[8].mxu0 }
 0x47b   :  { %v745_v55 = vadd.f32 %v826_v53, %v744_v54  ;;  %v877_v56 = vpop.f32.mrb[9].mxu0 }
 0x47c   :  { %v747_v57 = vpop.f32.mrb[10].mxu0 }
 0x47d   :  { %753 = vst [vmem:[#allocation7 + $0x8] sm:$0xff] %v745_v55  ;;  %v748_v58 = vadd.f32 %v826_v53, %v747_v57  ;;  %v878_v59 = vpop.f32.mrb[11].mxu0 }
 0x47f   :  { %754 = vst [vmem:[#allocation7 + $0x18] sm:$0xff] %v748_v58 }
 0x480   :  { %1011 = shalt.err (!%p1008_p6)
}
 0x481   :  { %s1012_s29 = scalar_lea.hbm %s1323_s11, 512 }
 0x482   :  { %p1013_p7 = scmp.ne.s32.totalorder %s1323_s11, %s1012_s29  ;;  %p1016_p8 = scmp.lt.u32.totalorder %s1012_s29, %s1323_s11 }
 0x484   :  { %p1018_p9 = pnand %p1016_p8, %p1013_p7 }
 0x486   :  { %1021 = shalt.err (!%p1018_p9)
}
 0x487   :  { %s1038_s0 = smov 256   ;;  %s1039_s2 = smov 16  }
 0x488   :  { %766 = dma.vmem_to_hbm [thread:$0]  %s761_s28, 512, %s1323_s11, [#allocation4], %s1038_s0, %s1038_s0, %s1039_s2  }
 0x489   :  { %1026 = dma.done.wait [#allocation4], 512  }
 0x48a   :  { %1027 = vsyncadd [#allocation4], 4294966784 }
 0x48b   :  { %770 = vsyncpa [#allocation3], 1 }
 0x48c   :  { %771 = vsyncpa [#allocation6], 1 }
 0x48d   :  { %772 = vsyncpa [#allocation4], 1 }

</bundles_post_ra>
